<compile_context>
chip_gen: v6e
topology: v6e:2x2x1
jax: 0.10.0
libtpu: 0.0.40
codegen_flags: <defaults>
</compile_context>

<pallas_src>
import functools

import jax
import jax.numpy as jnp
from jax.experimental import pallas as pl
from jax.experimental.pallas import tpu as pltpu


# Per-grid-step live-set target; leaves headroom inside v7x's 64 MiB VMEM.
_VMEM_BLOCK_BUDGET = 40 * 1024 * 1024


def _step_vmem_bytes(bb, qlen, klen, n_head, d_model, mm_itemsize):
    """Rough per-step VMEM live-set estimate for the block-size heuristic."""
    logits = 3 * bb * qlen * n_head * klen * 4          # e / p / attn live in f32
    q_blk = bb * qlen * d_model * 4
    k_blk = bb * klen * d_model * 4
    adj_blk = bb * qlen * klen * 1                      # int8 mask
    out_blk = bb * qlen * d_model * 4
    weights = (2 * d_model * n_head + d_model * d_model) * mm_itemsize
    # q/k/mask/out blocks are double-buffered by the BlockSpec pipeline.
    return logits + 2 * (q_blk + k_blk + adj_blk + out_blk) + 2 * weights


def _pick_batch_block(bsz, qlen, klen, n_head, d_model, mm_itemsize):
    """Largest batch block with >=2 grid steps (v7x: 2 TCs + pipelining) that
    keeps the per-step live set under the VMEM budget and stays (8,.)-aligned."""
    aligned = (qlen % 8 == 0) and (klen % 8 == 0)
    for bb in (d for d in range(bsz, 0, -1) if bsz % d == 0):
        if bb < bsz and not aligned:
            continue                      # partial blocks must stay sublane-aligned
        if bsz >= 2 and bsz // bb < 2:
            continue                      # keep at least 2 grid steps
        if _step_vmem_bytes(bb, qlen, klen, n_head, d_model, mm_itemsize) <= _VMEM_BLOCK_BUDGET:
            return bb
    # Nothing under budget: smallest legal block (klen tiling is the TODO above).
    return 1 if aligned else bsz


def _mha_kernel(q_ref, k_ref, mask_ref, waq_ref, wak_ref, wo_ref, o_ref, *, alpha):
    bb, qlen, klen = mask_ref.shape
    d_model = q_ref.shape[-1]
    n_head = waq_ref.shape[-1]
    d_head = d_model // n_head
    mm_dtype = waq_ref.dtype              # matmul operand dtype (f32 or bf16)

    q2 = q_ref[...]                       # (bb*qlen, d_model)  flattened in wrapper
    k2 = k_ref[...]                       # (bb*klen, d_model)  raw key

    # Fused projection + per-head GAT logit scores: one 2D MXU matmul per side.
    sq = jnp.dot(q2.astype(mm_dtype), waq_ref[...],
                 preferred_element_type=jnp.float32)           # (bb*qlen, n_head)
    sk = jnp.dot(k2.astype(mm_dtype), wak_ref[...],
                 preferred_element_type=jnp.float32)           # (bb*klen, n_head)

    # Head-major logits e[b, q, h, k] with klen on the lane axis.
    sq4 = sq.reshape(bb, qlen, n_head, 1)
    sk_t = jnp.swapaxes(sk.reshape(bb, klen, n_head), 1, 2)    # (bb, n_head, klen)
    e = sq4 + sk_t[:, None, :, :]                              # (bb, qlen, n_head, klen)

    # LeakyReLU(negative_slope=alpha)
    e = jnp.where(e >= 0, e, alpha * e)

    # masked_fill((1 - adj).bool(), -1e-08): wrapper passes (adj != 1) as int8.
    # NOTE: -1e-8 is ~0, so masked entries still get ~uniform softmax weight —
    # faithful to the PyTorch reference (likely an upstream bug, kept as-is).
    mask = (mask_ref[...] != 0)[:, :, None, :]                 # (bb, qlen, 1, klen)
    e = jnp.where(mask, jnp.float32(-1e-8), e)

    # Softmax over the key (lane) axis; identical per head to the reference.
    m = jnp.max(e, axis=-1, keepdims=True)
    p = jnp.exp(e - m)
    denom = jnp.sum(p, axis=-1, keepdims=True)
    attn = p * pl.reciprocal(denom, approx=True)               # (bb, qlen, n_head, klen)
    # TODO(synk): nn.Dropout skipped — module evaluated in eval/inference mode.

    # Context against the RAW key on the MXU (rank-3, single batch dim per head).
    ctx_heads = []
    for h in range(n_head):
        a_h = attn[:, :, h, :]                                  # (bb, qlen, klen)
        k_h = k2[:, h * d_head:(h + 1) * d_head].reshape(bb, klen, d_head)
        ctx_heads.append(
            jnp.einsum('bqk,bkd->bqd', a_h.astype(mm_dtype), k_h.astype(mm_dtype),
                       preferred_element_type=jnp.float32))     # (bb, qlen, d_head)
    ctx = jnp.concatenate(ctx_heads, axis=-1).reshape(bb * qlen, d_model)

    # Output projection (no bias) + Tanh + residual.
    proj = jnp.dot(ctx.astype(mm_dtype), wo_ref[...],
                   preferred_element_type=jnp.float32)          # (bb*qlen, d_model)
    # d_model < 128 -> masked stores here; lane-dense once d_model >= 128.
    o_ref[...] = (q2.astype(jnp.float32) + jnp.tanh(proj)).astype(o_ref.dtype)


def multihead_attention(query, key, adj, params, *, n_head, alpha,
                        batch_block=None, matmul_dtype=jnp.float32):
    bsz, qlen, d_model = query.shape
    klen = key.shape[1]
    d_head = d_model // n_head
    assert n_head * d_head == d_model

    wq, wk, wattn, wo = params["wq"], params["wk"], params["wattn"], params["wo"]

    # Fold Wq/Wk with the attn-Linear diagonal into (d_model, n_head) score
    # matrices (one column per head, NOT expanded to d_model columns):
    #   sq[i, h] = (x @ Wq.T)[i, h*dh:(h+1)*dh] @ wattn[h, :dh] = x[i, :] @ WAq[:, h]
    wa_q = wattn[:, :d_head]                                    # (n_head, d_head)
    wa_k = wattn[:, d_head:]                                    # (n_head, d_head)
    waq = jnp.einsum('hdj,hd->jh', wq.reshape(n_head, d_head, d_model), wa_q)
    wak = jnp.einsum('hdj,hd->jh', wk.reshape(n_head, d_head, d_model), wa_k)
    waq = waq.astype(matmul_dtype)                              # (d_model, n_head)
    wak = wak.astype(matmul_dtype)
    wo_t = wo.T.astype(matmul_dtype)                            # (d_model, d_model)

    # adj is pure mask data: ship it as int8 ((1 - adj).bool() == (adj != 1)).
    mask_i8 = (adj != 1).astype(jnp.int8)                       # (B, qlen, klen)

    # Wrapper-side flattening: batch folded into the sublane/M dimension so the
    # kernel never reshapes across the (8,128) tile boundary.
    q_flat = query.reshape(bsz * qlen, d_model)
    k_flat = key.reshape(bsz * klen, d_model)

    mm_itemsize = jnp.dtype(matmul_dtype).itemsize
    bb = (batch_block if batch_block is not None
          else _pick_batch_block(bsz, qlen, klen, n_head, d_model, mm_itemsize))
    assert bsz % bb == 0
    grid = (bsz // bb,)

    est = _step_vmem_bytes(bb, qlen, klen, n_head, d_model, mm_itemsize)
    vmem_limit = int(min(56 * 1024 * 1024, max(48 * 1024 * 1024, 1.25 * est)))

    kernel = functools.partial(_mha_kernel, alpha=alpha)

    out_flat = pl.pallas_call(
        kernel,
        out_shape=jax.ShapeDtypeStruct((bsz * qlen, d_model), query.dtype),
        grid_spec=pltpu.PrefetchScalarGridSpec(
            num_scalar_prefetch=0,
            grid=grid,
            in_specs=[
                pl.BlockSpec((bb * qlen, d_model), lambda b: (b, 0)),   # query (flat)
                pl.BlockSpec((bb * klen, d_model), lambda b: (b, 0)),   # key (flat, raw)
                pl.BlockSpec((bb, qlen, klen), lambda b: (b, 0, 0)),    # int8 mask
                pl.BlockSpec((d_model, n_head), lambda b: (0, 0)),      # WAq
                pl.BlockSpec((d_model, n_head), lambda b: (0, 0)),      # WAk
                pl.BlockSpec((d_model, d_model), lambda b: (0, 0)),     # Wo.T
            ],
            out_specs=pl.BlockSpec((bb * qlen, d_model), lambda b: (b, 0)),
        ),
        compiler_params=pltpu.CompilerParams(
            dimension_semantics=("parallel",),
            vmem_limit_bytes=vmem_limit,
        ),
    )(q_flat, k_flat, mask_i8, waq, wak, wo_t)

    return out_flat.reshape(bsz, qlen, d_model)


def reference(query, key, adj, params, *, n_head, alpha):
    """Pure-JAX mirror of the PyTorch forward (eval mode)."""
    bsz, qlen, d_model = query.shape
    klen = key.shape[1]
    d_head = d_model // n_head
    wq, wk, wattn, wo = params["wq"], params["wk"], params["wattn"], params["wo"]

    mh_q = (query @ wq.T).reshape(bsz, qlen, n_head, d_head)
    mh_k = (key @ wk.T).reshape(bsz, klen, n_head, d_head)
    cat = jnp.concatenate(
        [jnp.broadcast_to(mh_q[:, :, None], (bsz, qlen, klen, n_head, d_head)),
         jnp.broadcast_to(mh_k[:, None, :], (bsz, qlen, klen, n_head, d_head))],
        axis=-1)                                                  # (b,q,k,h,2d)
    full = jnp.einsum('bqkhd,nd->bqkhn', cat, wattn)              # (b,q,k,h,n)
    e = jnp.einsum('bqkhh->bqkh', full)                           # diagonal head pick
    e = jnp.where(e >= 0, e, alpha * e)
    e = jnp.where(((1.0 - adj) != 0.0)[:, :, :, None], jnp.float32(-1e-8), e)
    a = jax.nn.softmax(e, axis=-2)
    ctx = jnp.einsum('bqkn,bknd->bqnd', a, key.reshape(bsz, klen, n_head, d_head))
    out = jnp.tanh(ctx.reshape(bsz, qlen, d_model) @ wo.T)
    return query + out


if __name__ == "__main__":
    bsz, qlen, klen, d_model, n_head = 2, 8, 8, 32, 4
    d_head = d_model // n_head
    alpha = 0.2  # args.alpha (LeakyReLU negative slope)

    key0 = jax.random.PRNGKey(0)
    ks = jax.random.split(key0, 7)
    query = jax.random.normal(ks[0], (bsz, qlen, d_model), jnp.float32)
    key_x = jax.random.normal(ks[1], (bsz, klen, d_model), jnp.float32)
    adj = (jax.random.uniform(ks[2], (bsz, qlen, klen)) > 0.3).astype(jnp.float32)

    scale = 1.0 / jnp.sqrt(jnp.float32(d_model))
    params = {
        "wq": jax.random.normal(ks[3], (d_model, d_model), jnp.float32) * scale,
        "wk": jax.random.normal(ks[4], (d_model, d_model), jnp.float32) * scale,
        "wattn": jax.random.normal(ks[5], (n_head, 2 * d_head), jnp.float32) * scale,
        "wo": jax.random.normal(ks[6], (d_model, d_model), jnp.float32) * scale,
    }

    out = multihead_attention(query, key_x, adj, params, n_head=n_head, alpha=alpha)
    out = jax.block_until_ready(out)

    ref = reference(query, key_x, adj, params, n_head=n_head, alpha=alpha)
    assert out.shape == (bsz, qlen, d_model)
    # atol slightly above 1e-3: folded-weight accumulation order and the
    # approximate EUP reciprocal in the softmax normalization differ from the
    # exact-division f32 reference by O(1e-4).
    assert jnp.allclose(out, ref, rtol=1e-3, atol=2e-3), float(jnp.max(jnp.abs(out - ref)))
    print("KERNEL_OK")
</pallas_src>

<mosaic_0001>
module attributes {stable_mosaic.version = 11 : i64} {
  func.func @_mha_kernel(%arg0: i32, %arg1: memref<8x32xf32, #tpu.memory_space<vmem>>, %arg2: memref<8x32xf32, #tpu.memory_space<vmem>>, %arg3: memref<1x8x8xi8, #tpu.memory_space<vmem>>, %arg4: memref<32x4xf32, #tpu.memory_space<vmem>>, %arg5: memref<32x4xf32, #tpu.memory_space<vmem>>, %arg6: memref<32x32xf32, #tpu.memory_space<vmem>>, %arg7: memref<8x32xf32, #tpu.memory_space<vmem>>) attributes {dimension_semantics = [#tpu.dimension_semantics<parallel>], iteration_bounds = array<i64: 2>, scalar_prefetch = 0 : i64, scratch_operands = 0 : i64, tpu.core_type = #tpu.core_type<tc>, window_params = [{transform_indices = @transform_0, window_bounds = array<i64: 8, 32>}, {transform_indices = @transform_1, window_bounds = array<i64: 8, 32>}, {transform_indices = @transform_2, window_bounds = array<i64: 1, 8, 8>}, {pipeline_mode = #tpu.pipeline_mode<synchronous>, transform_indices = @transform_3, window_bounds = array<i64: 32, 4>}, {pipeline_mode = #tpu.pipeline_mode<synchronous>, transform_indices = @transform_4, window_bounds = array<i64: 32, 4>}, {pipeline_mode = #tpu.pipeline_mode<synchronous>, transform_indices = @transform_5, window_bounds = array<i64: 32, 32>}, {transform_indices = @transform_6, window_bounds = array<i64: 8, 32>}]} {
    %c0 = arith.constant 0 : index
    %c0_0 = arith.constant 0 : index
    %0 = vector.load %arg1[%c0, %c0_0] : memref<8x32xf32, #tpu.memory_space<vmem>>, vector<8x32xf32>
    %c0_1 = arith.constant 0 : index
    %c0_2 = arith.constant 0 : index
    %1 = vector.load %arg2[%c0_1, %c0_2] : memref<8x32xf32, #tpu.memory_space<vmem>>, vector<8x32xf32>
    %c0_3 = arith.constant 0 : index
    %c0_4 = arith.constant 0 : index
    %2 = vector.load %arg4[%c0_3, %c0_4] : memref<32x4xf32, #tpu.memory_space<vmem>>, vector<32x4xf32>
    %cst = arith.constant dense<0.000000e+00> : vector<8x4xf32>
    %3 = tpu.matmul %0, %2, %cst {dimension_numbers = #tpu.dot_dimension_numbers<[1], [0], [0], [1], [0, 0, 1, 1], [], []>} : vector<8x32xf32>, vector<32x4xf32>, vector<8x4xf32> -> vector<8x4xf32>
    %c0_5 = arith.constant 0 : index
    %c0_6 = arith.constant 0 : index
    %4 = vector.load %arg5[%c0_5, %c0_6] : memref<32x4xf32, #tpu.memory_space<vmem>>, vector<32x4xf32>
    %cst_7 = arith.constant dense<0.000000e+00> : vector<8x4xf32>
    %5 = tpu.matmul %1, %4, %cst_7 {dimension_numbers = #tpu.dot_dimension_numbers<[1], [0], [0], [1], [0, 0, 1, 1], [], []>} : vector<8x32xf32>, vector<32x4xf32>, vector<8x4xf32> -> vector<8x4xf32>
    %6 = vector.shape_cast %3 : vector<8x4xf32> to vector<1x8x4x1xf32>
    %7 = vector.shape_cast %5 : vector<8x4xf32> to vector<1x8x4xf32>
    %8 = tpu.transpose %7, [0, 2, 1] : vector<1x8x4xf32> -> vector<1x4x8xf32>
    %9 = vector.shape_cast %8 : vector<1x4x8xf32> to vector<1x1x4x8xf32>
    %10 = vector.broadcast %6 : vector<1x8x4x1xf32> to vector<1x8x4x8xf32>
    %11 = vector.broadcast %9 : vector<1x1x4x8xf32> to vector<1x8x4x8xf32>
    %12 = arith.addf %10, %11 : vector<1x8x4x8xf32>
    %cst_8 = arith.constant 0.000000e+00 : f32
    %13 = vector.broadcast %cst_8 : f32 to vector<1x8x4x8xf32>
    %14 = arith.cmpf oge, %12, %13 : vector<1x8x4x8xf32>
    %cst_9 = arith.constant 2.000000e-01 : f32
    %15 = vector.broadcast %cst_9 : f32 to vector<1x8x4x8xf32>
    %16 = arith.mulf %15, %12 : vector<1x8x4x8xf32>
    %17 = arith.select %14, %12, %16 : vector<1x8x4x8xi1>, vector<1x8x4x8xf32>
    %c0_10 = arith.constant 0 : index
    %c0_11 = arith.constant 0 : index
    %c0_12 = arith.constant 0 : index
    %18 = vector.load %arg3[%c0_10, %c0_11, %c0_12] : memref<1x8x8xi8, #tpu.memory_space<vmem>>, vector<1x8x8xi8>
    %c0_i8 = arith.constant 0 : i8
    %19 = vector.broadcast %c0_i8 : i8 to vector<1x8x8xi8>
    %20 = arith.cmpi ne, %18, %19 : vector<1x8x8xi8>
    %21 = vector.shape_cast %20 : vector<1x8x8xi1> to vector<1x8x1x8xi1>
    %cst_13 = arith.constant -9.99999993E-9 : f32
    %22 = vector.shape_cast %21 : vector<1x8x1x8xi1> to vector<1x8x1x8xi1>
    %23 = vector.broadcast %22 : vector<1x8x1x8xi1> to vector<1x8x4x8xi1>
    %24 = vector.broadcast %cst_13 : f32 to vector<1x8x4x8xf32>
    %25 = arith.select %23, %24, %17 : vector<1x8x4x8xi1>, vector<1x8x4x8xf32>
    %cst_14 = arith.constant dense<0xFF800000> : vector<1x8x4xf32>
    %26 = vector.multi_reduction <maximumf>, %25, %cst_14 [3] : vector<1x8x4x8xf32> to vector<1x8x4xf32>
    %27 = vector.shape_cast %26 : vector<1x8x4xf32> to vector<1x8x4x1xf32>
    %28 = vector.broadcast %27 : vector<1x8x4x1xf32> to vector<1x8x4x8xf32>
    %29 = arith.subf %25, %28 : vector<1x8x4x8xf32>
    %30 = math.exp %29 : vector<1x8x4x8xf32>
    %cst_15 = arith.constant dense<0.000000e+00> : vector<1x8x4xf32>
    %31 = vector.multi_reduction <add>, %30, %cst_15 [3] : vector<1x8x4x8xf32> to vector<1x8x4xf32>
    %32 = vector.shape_cast %31 : vector<1x8x4xf32> to vector<1x8x4x1xf32>
    %33 = tpu.reciprocal %32 {approx = true} : vector<1x8x4x1xf32> -> vector<1x8x4x1xf32>
    %34 = vector.broadcast %33 : vector<1x8x4x1xf32> to vector<1x8x4x8xf32>
    %35 = arith.mulf %30, %34 : vector<1x8x4x8xf32>
    %36 = vector.extract_strided_slice %35 {offsets = [0, 0, 0, 0], sizes = [1, 8, 1, 8], strides = [1, 1, 1, 1]} : vector<1x8x4x8xf32> to vector<1x8x1x8xf32>
    %37 = vector.shape_cast %36 : vector<1x8x1x8xf32> to vector<1x8x8xf32>
    %38 = vector.extract_strided_slice %1 {offsets = [0, 0], sizes = [8, 8], strides = [1, 1]} : vector<8x32xf32> to vector<8x8xf32>
    %39 = vector.shape_cast %38 : vector<8x8xf32> to vector<1x8x8xf32>
    "tpu.trace_start"() <{level = 10 : i32, message = "bqk,bkd->bqd"}> : () -> ()
    %cst_16 = arith.constant dense<0.000000e+00> : vector<1x8x8xf32>
    %40 = tpu.matmul %37, %39, %cst_16 {dimension_numbers = #tpu.dot_dimension_numbers<[2], [1], [1], [2], [0, 0, 0, 1, 1, 2], [0], [0]>} : vector<1x8x8xf32>, vector<1x8x8xf32>, vector<1x8x8xf32> -> vector<1x8x8xf32>
    "tpu.trace_stop"() : () -> ()
    %41 = vector.extract_strided_slice %35 {offsets = [0, 0, 1, 0], sizes = [1, 8, 1, 8], strides = [1, 1, 1, 1]} : vector<1x8x4x8xf32> to vector<1x8x1x8xf32>
    %42 = vector.shape_cast %41 : vector<1x8x1x8xf32> to vector<1x8x8xf32>
    %43 = vector.extract_strided_slice %1 {offsets = [0, 8], sizes = [8, 8], strides = [1, 1]} : vector<8x32xf32> to vector<8x8xf32>
    %44 = vector.shape_cast %43 : vector<8x8xf32> to vector<1x8x8xf32>
    "tpu.trace_start"() <{level = 10 : i32, message = "bqk,bkd->bqd"}> : () -> ()
    %cst_17 = arith.constant dense<0.000000e+00> : vector<1x8x8xf32>
    %45 = tpu.matmul %42, %44, %cst_17 {dimension_numbers = #tpu.dot_dimension_numbers<[2], [1], [1], [2], [0, 0, 0, 1, 1, 2], [0], [0]>} : vector<1x8x8xf32>, vector<1x8x8xf32>, vector<1x8x8xf32> -> vector<1x8x8xf32>
    "tpu.trace_stop"() : () -> ()
    %46 = vector.extract_strided_slice %35 {offsets = [0, 0, 2, 0], sizes = [1, 8, 1, 8], strides = [1, 1, 1, 1]} : vector<1x8x4x8xf32> to vector<1x8x1x8xf32>
    %47 = vector.shape_cast %46 : vector<1x8x1x8xf32> to vector<1x8x8xf32>
    %48 = vector.extract_strided_slice %1 {offsets = [0, 16], sizes = [8, 8], strides = [1, 1]} : vector<8x32xf32> to vector<8x8xf32>
    %49 = vector.shape_cast %48 : vector<8x8xf32> to vector<1x8x8xf32>
    "tpu.trace_start"() <{level = 10 : i32, message = "bqk,bkd->bqd"}> : () -> ()
    %cst_18 = arith.constant dense<0.000000e+00> : vector<1x8x8xf32>
    %50 = tpu.matmul %47, %49, %cst_18 {dimension_numbers = #tpu.dot_dimension_numbers<[2], [1], [1], [2], [0, 0, 0, 1, 1, 2], [0], [0]>} : vector<1x8x8xf32>, vector<1x8x8xf32>, vector<1x8x8xf32> -> vector<1x8x8xf32>
    "tpu.trace_stop"() : () -> ()
    %51 = vector.extract_strided_slice %35 {offsets = [0, 0, 3, 0], sizes = [1, 8, 1, 8], strides = [1, 1, 1, 1]} : vector<1x8x4x8xf32> to vector<1x8x1x8xf32>
    %52 = vector.shape_cast %51 : vector<1x8x1x8xf32> to vector<1x8x8xf32>
    %53 = vector.extract_strided_slice %1 {offsets = [0, 24], sizes = [8, 8], strides = [1, 1]} : vector<8x32xf32> to vector<8x8xf32>
    %54 = vector.shape_cast %53 : vector<8x8xf32> to vector<1x8x8xf32>
    "tpu.trace_start"() <{level = 10 : i32, message = "bqk,bkd->bqd"}> : () -> ()
    %cst_19 = arith.constant dense<0.000000e+00> : vector<1x8x8xf32>
    %55 = tpu.matmul %52, %54, %cst_19 {dimension_numbers = #tpu.dot_dimension_numbers<[2], [1], [1], [2], [0, 0, 0, 1, 1, 2], [0], [0]>} : vector<1x8x8xf32>, vector<1x8x8xf32>, vector<1x8x8xf32> -> vector<1x8x8xf32>
    "tpu.trace_stop"() : () -> ()
    %56 = tpu.concatenate %40, %45, %50, %55 in 2 : vector<1x8x8xf32>, vector<1x8x8xf32>, vector<1x8x8xf32>, vector<1x8x8xf32> -> vector<1x8x32xf32>
    %57 = vector.shape_cast %56 : vector<1x8x32xf32> to vector<8x32xf32>
    %c0_20 = arith.constant 0 : index
    %c0_21 = arith.constant 0 : index
    %58 = vector.load %arg6[%c0_20, %c0_21] : memref<32x32xf32, #tpu.memory_space<vmem>>, vector<32x32xf32>
    %cst_22 = arith.constant dense<0.000000e+00> : vector<8x32xf32>
    %59 = tpu.matmul %57, %58, %cst_22 {dimension_numbers = #tpu.dot_dimension_numbers<[1], [0], [0], [1], [0, 0, 1, 1], [], []>} : vector<8x32xf32>, vector<32x32xf32>, vector<8x32xf32> -> vector<8x32xf32>
    %60 = math.tanh %59 : vector<8x32xf32>
    %61 = arith.addf %0, %60 : vector<8x32xf32>
    %c0_23 = arith.constant 0 : index
    %c0_24 = arith.constant 0 : index
    %62 = vector.load %arg7[%c0_23, %c0_24] : memref<8x32xf32, #tpu.memory_space<vmem>>, vector<8x32xf32>
    tpu.vector_store %arg7[%c0_23, %c0_24], %61 {strides = array<i32>} : memref<8x32xf32, #tpu.memory_space<vmem>>, vector<8x32xf32>,
    return
  }
  func.func @transform_0(%arg0: i32) -> (i32, i32) {
    %c0_i32 = arith.constant 0 : i32
    %c0_i32_0 = arith.constant 0 : i32
    return %arg0, %c0_i32 : i32, i32
  }
  func.func @transform_1(%arg0: i32) -> (i32, i32) {
    %c0_i32 = arith.constant 0 : i32
    %c0_i32_0 = arith.constant 0 : i32
    return %arg0, %c0_i32 : i32, i32
  }
  func.func @transform_2(%arg0: i32) -> (i32, i32, i32) {
    %c0_i32 = arith.constant 0 : i32
    %c0_i32_0 = arith.constant 0 : i32
    %c0_i32_1 = arith.constant 0 : i32
    return %arg0, %c0_i32, %c0_i32_0 : i32, i32, i32
  }
  func.func @transform_3(%arg0: i32) -> (i32, i32) {
    %c0_i32 = arith.constant 0 : i32
    %c0_i32_0 = arith.constant 0 : i32
    %c0_i32_1 = arith.constant 0 : i32
    return %c0_i32, %c0_i32_0 : i32, i32
  }
  func.func @transform_4(%arg0: i32) -> (i32, i32) {
    %c0_i32 = arith.constant 0 : i32
    %c0_i32_0 = arith.constant 0 : i32
    %c0_i32_1 = arith.constant 0 : i32
    return %c0_i32, %c0_i32_0 : i32, i32
  }
  func.func @transform_5(%arg0: i32) -> (i32, i32) {
    %c0_i32 = arith.constant 0 : i32
    %c0_i32_0 = arith.constant 0 : i32
    %c0_i32_1 = arith.constant 0 : i32
    return %c0_i32, %c0_i32_0 : i32, i32
  }
  func.func @transform_6(%arg0: i32) -> (i32, i32) {
    %c0_i32 = arith.constant 0 : i32
    %c0_i32_0 = arith.constant 0 : i32
    return %arg0, %c0_i32 : i32, i32
  }
}

</mosaic_0001>

<bundles_post_ra>
// kernel: tpu_custom_call.1
= control target key start
LH: loop header
LB: loop body
LE: loop exit
PB: predicated region body
PF: predicated region fallthrough
CT: control target
= control target key end

     0   :  { %11 = vsyncpa [#allocation3], 0  ;;  %s2020_s0 = inlined_call_operand.vmem [shape: f32[16,32], index: 0, kind: input, shape index: {}]   ;;  %s2021_s1 = inlined_call_operand.vmem [shape: f32[16,32], index: 1, kind: input, shape index: {}]   ;;  %s2022_s2 = inlined_call_operand.vmem [shape: s8[2,8,8], index: 2, kind: input, shape index: {}]   ;;  %s2023_s3 = inlined_call_operand.vmem [shape: f32[32,4], index: 3, kind: input, shape index: {}]   ;;  %s2024_s4 = inlined_call_operand.vmem [shape: f32[32,4], index: 4, kind: input, shape index: {}]   ;;  %s2025_s5 = inlined_call_operand.vmem [shape: f32[32,32], index: 5, kind: input, shape index: {}]   ;;  %s2026_s6 = inlined_call_operand.hbm [shape: f32[16,32], index: 6, kind: output, shape index: {}]  }
   0x1   :  { %13 = vsyncpa [#allocation3 + $0x1], 0  ;;  %s1671_s21 = smov 0   ;;  %s1673_s22 = smov 0  }
   0x2   :  { %s1675_s23 = smov 0   ;;  %s1677_s24 = smov 0  }
   0x3 LB: > { %s1692_s25 = sadd.s32 4294967295, %s1623_s24   ;;  %s1385_s26 = sadd.s32 4294967294, %s1623_s24   ;;  %s1623_s24 = sphi %s1677_s24, %s2042_s24   ;;  %s1619_s23 = sphi %s1675_s23, %s2041_s23   ;;  %s1615_s22 = sphi %s1673_s22, %s2040_s22   ;;  %s1611_s21 = sphi %s1671_s21, %s2039_s21  }
   0x4   : > { %s1696_s27 = sadd.s32 1, %s1623_s24   ;;  %s167_s28 = sadd.s32 1, %s1619_s23 }
   0x5   : > { %s164_s29 = ssub.s32 %s1623_s24, %s1696_s27  ;;  %p177_p0 = scmp.ne.s32.totalorder %s1619_s23, %s1615_s22 }
   0x6   : > { %p165_p1 = scmp.eq.s32.totalorder %s164_s29, 0  ;;  %p178_p2 = scmp.eq.s32.totalorder %s1692_s25, 1 }
   0x7   : > { %p183_p3 = scmp.ne.s32.totalorder %s1615_s22, %s1611_s21  ;;  %p184_p4 = scmp.eq.s32.totalorder %s1385_s26, 1 }
   0x8   : > { %s1707_s30 = scalar_select %p165_p1, %s1619_s23, %s167_s28  }
   0x9   : > { %p1709_p5 = por %p178_p2, %p177_p0  ;;  %p1713_p6 = por %p184_p4, %p183_p3 }
   0xa   : > { %p1388_p7 = scmp.ge.s32.totalorder %s1623_s24, 1  ;;  %p232_p8 = scmp.lt.s32.totalorder %s1623_s24, 3 }
   0xc   : > { %p233_p9 = pnand %p1388_p7, %p232_p8 }
   0xd   : > { %p269_p10 = scmp.lt.s32.totalorder (!%p233_p9), %s1692_s25, 1  ;;  %s1630_s29 = smov (!%p233_p9), 120  }
   0xe   : > { %236 = sbr.rel (%p233_p9) target bundleno = 1274 (0x4fa), region = 44  ;;  %s1631_s9 = smov (!%p233_p9), 104  }
   0xf   : > { %s1634_s26 = smov (!%p233_p9), 24   ;;  %s1635_s17 = smov (!%p233_p9), [#allocation2]  }
  0x13   : > { %v288_v0 = vld [vmem:[%s2023_s3 + $0x18] sm:$0xff]  ;;  %v1625_v1 = vmov 0.0   ;;  %v287_v2 = vld [vmem:[%s2023_s3 + $0x10] sm:$0xff]  ;;  %vm1626_vm0 = vmmov 0   ;;  %s1733_s15 = scalar_select %p269_p10, %s1692_s25, 1  ;;  %v286_v5 = vld [vmem:[%s2023_s3 + $0x8] sm:$0xff]  ;;  %v440_v11 = vlaneseq }
  0x14   : > { %1427 = vmatprep.subr.mxu0 %v1625_v1  ;;  %1435 = vmatprep.mubr.msk.f32.mxu0 %vm1626_vm0, %v1625_v1  ;;  %v366_v3 = vld [vmem:[%s2024_s4 + $0x18] sm:$0xff]  ;;  %v365_v4 = vld [vmem:[%s2024_s4 + $0x10] sm:$0xff]  ;;  %v364_v6 = vld [vmem:[%s2024_s4 + $0x8] sm:$0xff]  ;;  %vm289_vm1 = vcmask 261120   ;;  %v1627_v33 = vmov 1966171168  }
  0x15   : > { %1428 = vmatpush3.msra.mxu0 %v288_v0  ;;  %1438 = vmatprep.subr.mxu1 %v1625_v1  ;;  %s1390_s20 = sshll.u32 %s1733_s15, 3  ;;  %v285_v7 = vld [vmem:[%s2023_s3] sm:$0xff]  ;;  %v441_v12 = vshrl.u32 %v440_v11, 7  ;;  %s1392_s19 = sshll.u32 %s1733_s15, 1  ;;  %v564_v34 = vunpack.c.l.s4 %v1627_v33  ;;  %v1628_v38 = vmov 0  }
  0x16   : > { %1429 = vmatprep.subr.mxu0 %v1625_v1  ;;  %1439 = vmatpush3.msra.mxu1 %v366_v3  ;;  %s272_s12 = scalar_lea.vmem %s2020_s0, %s1390_s20  ;;  %s276_s16 = scalar_lea.vmem %s2021_s1, %s1390_s20  ;;  %v363_v9 = vld [vmem:[%s2024_s4] sm:$0xff] }
  0x17   : > { %1430 = vmatpush3.msra.mxu0 %v287_v2  ;;  %1440 = vmatprep.subr.mxu1 %v1625_v1  ;;  %v1758_v8 = vld [vmem:[%s272_s12] sm:$0xff]  ;;  %v449_v13 = vsub.s32 1, %v441_v12  ;;  %v1782_v14 = vsub.s32 0, %v441_v12  ;;  %v456_v18 = vsub.s32 2, %v441_v12  ;;  %v463_v19 = vsub.s32 3, %v441_v12  ;;  %s280_s28 = scalar_lea.vmem %s2022_s2, %s1392_s19  ;;  %s1629_s15 = smov 112  }
  0x18   : > { %1431 = vmatprep.subr.mxu0 %v1625_v1  ;;  %1441 = vmatpush3.msra.mxu1 %v365_v4  ;;  %v1766_v10 = vld [vmem:[%s276_s16] sm:$0xff]  ;;  %v470_v25 = vsub.s32 4, %v441_v12  ;;  %v477_v26 = vsub.s32 5, %v441_v12  ;;  %v484_v29 = vsub.s32 6, %v441_v12  ;;  %v491_v30 = vsub.s32 7, %v441_v12  ;;  %s1632_s19 = smov 16  }
  0x19   : > { %1432 = vmatpush3.msra.mxu0 %v286_v5  ;;  %1442 = vmatprep.subr.mxu1 %v1625_v1  ;;  %v560_v35 = vld [vmem:[%s280_s28] sm:$0x3]  ;;  %v565_v36 = vunpack.c.0.s8 %v564_v34  ;;  %s1633_s20 = smov 8   ;;  %s266_s28 = sand.u32 1, %s1615_s22  }
  0x1a   : > { %1433 = vmatprep.subr.mxu0 %v1625_v1  ;;  %1443 = vmatpush3.msra.mxu1 %v364_v6  ;;  %vm561_vm2 = vnez %v560_v35  ;;  %s1289_s14 = scalar_lea.sflag [#allocation3], %s266_s28 }
  0x1b   : > { %1434 = vmatpush3.msra.mxu0 %v285_v7  ;;  %1444 = vmatprep.subr.mxu1 %v1625_v1  ;;  %v568_v37 = vsub.s32 %v565_v36, %v441_v12  ;;  %v562_v39 = vsel %vm561_vm2, 16843009, %v1628_v38 }
  0x1c   : > { %1436 = vmatmul.mubr.msk.f32.vlgmr.msra.gmra.mxu0 %vm289_vm1, %v1758_v8  ;;  %1445 = vmatpush3.msra.mxu1 %v363_v9 }
  0x1d   : > { %1446 = vmatprep.mubr.msk.f32.mxu1 %vm1626_vm0, %v1625_v1  ;;  %1449 = vmatprep.subr.mxu1 %v1625_v1  ;;  %v569_v40 = vrot.slane %v562_v39, %v568_v37 }
  0x1e   : > { %1447 = vmatmul.mubr.msk.f32.vlgmr.msra.gmra.mxu1 %vm289_vm1, %v1766_v10  ;;  %1459 = vmatprep.subr.mxu0 %v1625_v1 }
  0x1f   : > { %1450 = vmatpush3.msra.mxu1 %v1766_v10  ;;  %1451 = vmatprep.mubr.msk.f32.mxu1 %vm1626_vm0, %v1625_v1  ;;  %v576_v41 = vshrl.u32 %v569_v40, 16  ;;  %v574_v42 = vshrl.u32 %v569_v40, 8  ;;  %v578_v43 = vshrl.u32 %v569_v40, 24  ;;  %v589_v46 = vpack.c.b16 %v569_v40, %v569_v40 }
  0x20   : > { %1454 = vmatprep.subr.mxu1 %v1625_v1  ;;  %1461 = vmatprep.mubr.msk.f32.mxu0 %vm1626_vm0, %v1625_v1  ;;  %v570_v51 = vcombine.high %v569_v40, %v569_v40 }
  0x21   : > { %v593_v44 = vpack.c.b16 %v576_v41, %v576_v41  ;;  %v591_v45 = vpack.c.b16 %v574_v42, %v574_v42  ;;  %v595_v47 = vpack.c.b16 %v578_v43, %v578_v43  ;;  %v590_v50 = vpack.c.b8 %v589_v46, %v589_v46 }
  0x22   : > { %v597_v53 = vpack.c.b16 %v570_v51, %v570_v51  ;;  %v583_v54 = vshrl.u32 %v570_v51, 8  ;;  %v585_v62 = vshrl.u32 %v570_v51, 16  ;;  %v587_v11 = vshrl.u32 %v570_v51, 24 }
  0x23   : > { %v594_v48 = vpack.c.b8 %v593_v44, %v593_v44  ;;  %v592_v49 = vpack.c.b8 %v591_v45, %v591_v45  ;;  %v596_v52 = vpack.c.b8 %v595_v47, %v595_v47  ;;  %vm605_vm5 = vnez %v590_v50 }
  0x24   : > { %v613_v57 = vsel %vm605_vm5, 16843009, %v1628_v38  ;;  %v598_v58 = vpack.c.b8 %v597_v53, %v597_v53  ;;  %v599_v61 = vpack.c.b16 %v583_v54, %v583_v54  ;;  %v601_v5 = vpack.c.b16 %v585_v62, %v585_v62 }
  0x25   : > { %vm607_vm3 = vnez %v594_v48  ;;  %vm606_vm4 = vnez %v592_v49  ;;  %vm608_vm6 = vnez %v596_v52  ;;  %v621_v0 = vunpack.c.0.s8 %v613_v57 }
  0x26   : > { %v615_v55 = vsel %vm607_vm3, 16843009, %v1628_v38  ;;  %v614_v56 = vsel %vm606_vm4, 16843009, %v1628_v38  ;;  %v616_v60 = vsel %vm608_vm6, 16843009, %v1628_v38  ;;  %vm609_vm7 = vnez %v598_v58 }
  0x27   : > { %v623_v59 = vunpack.c.0.s8 %v615_v55  ;;  %v622_v63 = vunpack.c.0.s8 %v614_v56  ;;  %v624_v2 = vunpack.c.0.s8 %v616_v60  ;;  %v600_v4 = vpack.c.b8 %v599_v61, %v599_v61 }
  0x28   : > { %v629_v7 = vpack.i.b16 %v621_v0, %v621_v0  ;;  %v617_v9 = vsel %vm609_vm7, 16843009, %v1628_v38 }
  0x29   : > { %v633_v3 = vpack.i.b16 %v623_v59, %v623_v59  ;;  %v631_v6 = vpack.i.b16 %v622_v63, %v622_v63  ;;  %v635_v12 = vpack.i.b16 %v624_v2, %v624_v2  ;;  %vm610_vm8 = vnez %v600_v4 }
  0xdc   : > { %v359_v15 = vpop.f32.mrf.mxu0 }
  0xdd   : > { %v450_v16 = vrot.slane %v359_v15, %v449_v13  ;;  %v443_v17 = vrot.slane %v359_v15, %v1782_v14  ;;  %v457_v23 = vrot.slane %v359_v15, %v456_v18  ;;  %v464_v24 = vrot.slane %v359_v15, %v463_v19 }
  0xde   : > { %v1437_v20 = vpop.f32.mrf.mxu0  ;;  %v436_v21 = vpop.f32.mrf.mxu1  ;;  %v471_v27 = vrot.slane %v359_v15, %v470_v25  ;;  %v478_v28 = vrot.slane %v359_v15, %v477_v26  ;;  %v485_v31 = vrot.slane %v359_v15, %v484_v29  ;;  %v492_v32 = vrot.slane %v359_v15, %v491_v30 }
  0xdf   : > { %452 = vbcast.lane.b32.xlu0 %v450_v16, 256  ;;  %445 = vbcast.lane.b32.xlu1 %v443_v17, 256  ;;  %v634_v13 = vpack.i.b8 %v633_v3, %v633_v3  ;;  %v625_v15 = vunpack.c.0.s8 %v617_v9  ;;  %v602_v16 = vpack.c.b8 %v601_v5, %v601_v5  ;;  %v632_v18 = vpack.i.b8 %v631_v6, %v631_v6 }
  0xe0   : > { %v1448_v22 = vpop.f32.mrf.mxu1  ;;  %v630_v19 = vpack.i.b8 %v629_v7, %v629_v7  ;;  %v603_v20 = vpack.c.b16 %v587_v11, %v587_v11 }
  0xe1   : > { %v618_v22 = vsel %vm610_vm8, 16843009, %v1628_v38  ;;  %vm647_vm9 = vnez %v634_v13  ;;  %vm611_vm10 = vnez %v602_v16  ;;  %vm646_vm11 = vnez %v632_v18 }
  0xe2   : > { %vm645_vm12 = vnez %v630_v19  ;;  %v604_v25 = vpack.c.b8 %v603_v20, %v603_v20  ;;  %v655_v26 = vsel %vm647_vm9, 16843009, %v1628_v38  ;;  %v654_v29 = vsel %vm646_vm11, 16843009, %v1628_v38 }
  0xe3   : > { %459 = vbcast.lane.b32.xlu0 %v457_v23, 256  ;;  %466 = vbcast.lane.b32.xlu1 %v464_v24, 256  ;;  %v637_v23 = vpack.i.b16 %v625_v15, %v625_v15  ;;  %v626_v24 = vunpack.c.0.s8 %v618_v22  ;;  %v653_v30 = vsel %vm645_vm12, 16843009, %v1628_v38  ;;  %v662_v36 = vunpack.c.0.s8 %v654_v29 }
  0xe4   : > { %vm612_vm14 = vnez %v604_v25  ;;  %v661_v37 = vunpack.c.0.s8 %v653_v30 }
  0xe5   : > { %v639_v34 = vpack.i.b16 %v626_v24, %v626_v24  ;;  %v620_v40 = vsel %vm612_vm14, 16843009, %v1628_v38  ;;  %vm670_vm3 = vcmp.ne.s32.totalorder %v662_v36, 0 }
  0xe6   : > { %vm669_vm4 = vcmp.ne.s32.totalorder %v661_v37, 0  ;;  %v628_v45 = vunpack.c.0.s8 %v620_v40  ;;  %v678_v48 = vsel %vm670_vm3, 1, %v1628_v38 }
  0xe7   : > { %473 = vbcast.lane.b32.xlu0 %v471_v27, 256  ;;  %480 = vbcast.lane.b32.xlu1 %v478_v28, 256  ;;  %v619_v28 = vsel %vm611_vm10, 16843009, %v1628_v38  ;;  %v640_v42 = vpack.i.b8 %v639_v34, %v639_v34  ;;  %v677_v49 = vsel %vm669_vm4, 1, %v1628_v38  ;;  %v692_v57 = vrot.slane %v678_v48, %v1782_v14 }
  0xe8   : > { %v627_v35 = vunpack.c.0.s8 %v619_v28  ;;  %v643_v55 = vpack.i.b16 %v628_v45, %v628_v45  ;;  %v688_v58 = vrot.slane %v677_v49, %v1782_v14  ;;  %vm733_vm10 = vcmask 60416  }
  0xe9   : > { %vm650_vm6 = vnez %v640_v42  ;;  %vm1827_vm11 = vcmp.eq.s32.totalorder %v692_v57, 1 }
  0xea   : > { %v641_v43 = vpack.i.b16 %v627_v35, %v627_v35  ;;  %v658_v56 = vsel %vm650_vm6, 16843009, %v1628_v38  ;;  %v644_v0 = vpack.i.b8 %v643_v55, %v643_v55  ;;  %vm1831_vm12 = vcmp.eq.s32.totalorder %v688_v58, 1 }
  0xeb   : > { %487 = vbcast.lane.b32.xlu0 %v485_v31, 256  ;;  %494 = vbcast.lane.b32.xlu1 %v492_v32, 256  ;;  %v638_v31 = vpack.i.b8 %v637_v23, %v637_v23  ;;  %v663_v32 = vunpack.c.0.s8 %v655_v26  ;;  %v666_v63 = vunpack.c.0.s8 %v658_v56 }
  0xec   : > { %v642_v51 = vpack.i.b8 %v641_v43, %v641_v43  ;;  %vm1841_vm3 = vnez %v644_v0 }
  0xed   : > { %vm649_vm15 = vnez %v638_v31  ;;  %vm671_vm2 = vcmp.ne.s32.totalorder %v663_v32, 0  ;;  %v660_v31 = vsel %vm1841_vm3, 16843009, %v1628_v38  ;;  %vm834_vm3 = vcmask 1042434  }
  0xee   : > { %v657_v44 = vsel %vm649_vm15, 16843009, %v1628_v38  ;;  %v679_v46 = vsel %vm671_vm2, 1, %v1628_v38  ;;  %vm651_vm8 = vnez %v642_v51  ;;  %vm1837_vm2 = vcmp.ne.s32.totalorder %v666_v63, 0 }
  0xef   : > { %v665_v50 = vunpack.c.0.s8 %v657_v44  ;;  %v696_v53 = vrot.slane %v679_v46, %v1782_v14  ;;  %v659_v11 = vsel %vm651_vm8, 16843009, %v1628_v38  ;;  %v682_v35 = vsel %vm1837_vm2, 1, %v1628_v38 }
  0xf0   : > { %v668_v37 = vunpack.c.0.s8 %v660_v31  ;;  %v708_v40 = vrot.slane %v682_v35, %v1782_v14 }
  0xf1   : > { %vm673_vm7 = vcmp.ne.s32.totalorder %v665_v50, 0  ;;  %vm1818_vm9 = vcmp.eq.s32.totalorder %v696_v53, 1 }
  0xf2   : > { %v681_v9 = vsel %vm673_vm7, 1, %v1628_v38 }
  0xf3   : > { %v704_v30 = vrot.slane %v681_v9, %v1782_v14 }
  0xf5   : > { %vm721_vm8 = vcmp.eq.s32.totalorder %v704_v30, 1 }
 0x109   : > { %496 = vxpose.xlu0.b32.start.end [1/1] (short) (narrow) %v436_v21, 8  ;;  %v636_v21 = vpack.i.b8 %v635_v12, %v635_v12 }
 0x10b   : > { %vm648_vm13 = vnez %v636_v21 }
 0x10c   : > { %v656_v33 = vsel %vm648_vm13, 16843009, %v1628_v38 }
 0x10d   : > { %v664_v39 = vunpack.c.0.s8 %v656_v33 }
 0x10f   : > { %vm672_vm5 = vcmp.ne.s32.totalorder %v664_v39, 0 }
 0x110   : > { %v680_v54 = vsel %vm672_vm5, 1, %v1628_v38 }
 0x111   : > { %v700_v59 = vrot.slane %v680_v54, %v1782_v14 }
 0x113   : > { %vm720_vm5 = vcmp.eq.s32.totalorder %v700_v59, 1 }
 0x151   : > { %v1795_v17 = vpop.permute.xlu0 %452  ;;  %v446_v47 = vpop.permute.xlu1 %445 }
 0x155   : > { %v460_v27 = vpop.permute.xlu0 %459  ;;  %v467_v60 = vpop.permute.xlu1 %466 }
 0x159   : > { %v474_v41 = vpop.permute.xlu0 %473  ;;  %v481_v28 = vpop.permute.xlu1 %480 }
 0x15d   : > { %v1808_v52 = vpop.permute.xlu0 %487  ;;  %v495_v46 = vpop.permute.xlu1 %494 }
 0x185   : > { %v1816_v61 = vpop.trf.xlu0 }
 0x186   : > { %v530_v2 = vadd.f32 %v1816_v61, %v460_v27  ;;  %v529_v3 = vadd.f32 %v1816_v61, %v1795_v17  ;;  %v528_v4 = vadd.f32 %v1816_v61, %v446_v47  ;;  %v531_v5 = vadd.f32 %v1816_v61, %v467_v60 }
 0x187   : > { %v532_v21 = vadd.f32 %v1816_v61, %v474_v41  ;;  %v667_v27 = vunpack.c.0.s8 %v659_v11  ;;  %v533_v34 = vadd.f32 %v1816_v61, %v481_v28  ;;  %v534_v43 = vadd.f32 %v1816_v61, %v1808_v52 }
 0x188   : > { %vm538_vm13 = vcmp.ge.f32.partialorder %v530_v2, 0.0  ;;  %v546_v12 = vmul.f32 0.2, %v530_v2  ;;  %vm537_vm14 = vcmp.ge.f32.partialorder %v529_v3, 0.0  ;;  %v545_v13 = vmul.f32 0.2, %v529_v3 }
 0x189   : > { %vm536_vm15 = vcmp.ge.f32.partialorder %v528_v4, 0.0  ;;  %v544_v15 = vmul.f32 0.2, %v528_v4  ;;  %v547_v20 = vmul.f32 0.2, %v531_v5  ;;  %vm539_vm4 = vcmp.ge.f32.partialorder %v531_v5, 0.0 }
 0x18a   : > { %v554_v18 = vsel %vm538_vm13, %v530_v2, %v546_v12  ;;  %v553_v19 = vsel %vm537_vm14, %v529_v3, %v545_v13  ;;  %v548_v33 = vmul.f32 0.2, %v532_v21  ;;  %vm540_vm6 = vcmp.ge.f32.partialorder %v532_v21, 0.0 }
 0x18b   : > { %v1848_v22 = vsel %vm1818_vm9, -1e-08, %v554_v18  ;;  %v1852_v23 = vsel %vm1827_vm11, -1e-08, %v553_v19  ;;  %v552_v24 = vsel %vm536_vm15, %v528_v4, %v544_v15  ;;  %v555_v32 = vsel %vm539_vm4, %v531_v5, %v547_v20 }
 0x18c   : > { %v740_v25 = vsel %vm733_vm10, %v1848_v22, -inf  ;;  %v737_v26 = vsel %vm733_vm10, %v1852_v23, -inf  ;;  %v725_v29 = vsel %vm1831_vm12, -1e-08, %v552_v24  ;;  %vm675_vm7 = vcmp.ne.s32.totalorder %v667_v27, 0 }
 0x18d   : > { %741 = vmax.xlane.f32.xlu0 %v740_v25  ;;  %738 = vmax.xlane.f32.xlu1 %v737_v26  ;;  %v734_v36 = vsel %vm733_vm10, %v725_v29, -inf  ;;  %v728_v39 = vsel %vm720_vm5, -1e-08, %v555_v32  ;;  %v556_v41 = vsel %vm540_vm6, %v532_v21, %v548_v33  ;;  %v549_v42 = vmul.f32 0.2, %v533_v34 }
 0x18e   : > { %vm541_vm9 = vcmp.ge.f32.partialorder %v533_v34, 0.0  ;;  %v683_v44 = vsel %vm675_vm7, 1, %v1628_v38  ;;  %v743_v45 = vsel %vm733_vm10, %v728_v39, -inf  ;;  %vm676_vm11 = vcmp.ne.s32.totalorder %v668_v37, 0 }
 0x18f   : > { %v729_v47 = vsel %vm721_vm8, -1e-08, %v556_v41  ;;  %vm722_vm12 = vcmp.eq.s32.totalorder %v708_v40, 1  ;;  %v557_v48 = vsel %vm541_vm9, %v533_v34, %v549_v42  ;;  %v550_v49 = vmul.f32 0.2, %v534_v43 }
 0x190   : > { %v712_v50 = vrot.slane %v683_v44, %v1782_v14  ;;  %v535_v51 = vadd.f32 %v1816_v61, %v495_v46  ;;  %vm542_vm13 = vcmp.ge.f32.partialorder %v534_v43, 0.0  ;;  %v684_v53 = vsel %vm676_vm11, 1, %v1628_v38 }
 0x191   : > { %735 = vmax.xlane.f32.xlu1 %v734_v36  ;;  %v746_v52 = vsel %vm733_vm10, %v729_v47, -inf  ;;  %v730_v54 = vsel %vm722_vm12, -1e-08, %v557_v48  ;;  %v558_v55 = vsel %vm542_vm13, %v534_v43, %v550_v49  ;;  %v716_v57 = vrot.slane %v684_v53, %v1782_v14 }
 0x192   : > { %vm723_vm14 = vcmp.eq.s32.totalorder %v712_v50, 1  ;;  %v551_v56 = vmul.f32 0.2, %v535_v51  ;;  %vm543_vm15 = vcmp.ge.f32.partialorder %v535_v51, 0.0  ;;  %v749_v58 = vsel %vm733_vm10, %v730_v54, -inf }
 0x193   : > { %v731_v59 = vsel %vm723_vm14, -1e-08, %v558_v55  ;;  %vm724_vm2 = vcmp.eq.s32.totalorder %v716_v57, 1  ;;  %vm837_vm4 = vcmask 1043459   ;;  %vm840_vm5 = vcmask 1044484  }
 0x194   : > { %v559_v60 = vsel %vm543_vm15, %v535_v51, %v551_v56  ;;  %v752_v61 = vsel %vm733_vm10, %v731_v59, -inf  ;;  %vm843_vm6 = vcmask 1045509   ;;  %vm846_vm7 = vcmask 1046534  }
 0x195   : > { %744 = vmax.xlane.f32.xlu1 %v743_v45  ;;  %v732_v38 = vsel %vm724_vm2, -1e-08, %v559_v60  ;;  %vm849_vm8 = vcmask 1047559   ;;  %vm851_vm9 = vcmask 64512   ;;  %vm1206_vm11 = vcmask 195584  }
 0x196   : > { %v755_v62 = vsel %vm733_vm10, %v732_v38, -inf }
 0x199   : > { %747 = vmax.xlane.f32.xlu1 %v746_v52 }
 0x19d   : > { %750 = vmax.xlane.f32.xlu1 %v749_v58 }
 0x1a1   : > { %753 = vmax.xlane.f32.xlu1 %v752_v61 }
 0x1a5   : > { %756 = vmax.xlane.f32.xlu1 %v755_v62 }
 0x216   : > { %v742_v63 = vpop.xlane.xlu0 %741  ;;  %v739_v0 = vpop.xlane.xlu1 %738 }
 0x217   : > { %v760_v2 = vsub.f32 %v1848_v22, %v742_v63  ;;  %v759_v14 = vsub.f32 %v1852_v23, %v739_v0 }
 0x219   : > { %v768_v3 = vmul.f32 1.442695, %v759_v14  ;;  %v770_v4 = vmul.f32 1.442695, %v760_v2 }
 0x21a   : > { %v736_v5 = vpop.xlane.xlu1 %735 }
 0x21b   : > { %v758_v6 = vsub.f32 %v725_v29, %v736_v5  ;;  %1529 = vpow2.f32 %v768_v3 }
 0x21c   : > { %1531 = vpow2.f32 %v770_v4 }
 0x21d   : > { %v766_v7 = vmul.f32 1.442695, %v758_v6 }
 0x21e   : > { %v745_v9 = vpop.xlane.xlu1 %744 }
 0x21f   : > { %v761_v11 = vsub.f32 %v728_v39, %v745_v9  ;;  %1533 = vpow2.f32 %v766_v7 }
 0x221   : > { %v772_v12 = vmul.f32 1.442695, %v761_v11 }
 0x222   : > { %v748_v13 = vpop.xlane.xlu1 %747 }
 0x223   : > { %v762_v15 = vsub.f32 %v729_v47, %v748_v13  ;;  %1535 = vpow2.f32 %v772_v12 }
 0x225   : > { %v774_v16 = vmul.f32 1.442695, %v762_v15 }
 0x226   : > { %v751_v17 = vpop.xlane.xlu1 %750 }
 0x227   : > { %1537 = vpow2.f32 %v774_v16  ;;  %v763_v18 = vsub.f32 %v730_v54, %v751_v17 }
 0x228   : > { %v1530_v19 = vpop.eup %1529 }
 0x229   : > { %v776_v20 = vmul.f32 1.442695, %v763_v18  ;;  %v785_v21 = vsel %vm733_vm10, %v1530_v19, 0.0  ;;  %v1532_v23 = vpop.eup %1531 }
 0x22a   : > { %v754_v22 = vpop.xlane.xlu1 %753  ;;  %786 = vadd.xlane.f32.xlu1 %v785_v21  ;;  %v788_v26 = vsel %vm733_vm10, %v1532_v23, 0.0 }
 0x22b   : > { %1539 = vpow2.f32 %v776_v20  ;;  %v764_v24 = vsub.f32 %v731_v59, %v754_v22 }
 0x22c   : > { %v1534_v28 = vpop.eup %1533 }
 0x22d   : > { %v778_v25 = vmul.f32 1.442695, %v764_v24  ;;  %v782_v31 = vsel %vm733_vm10, %v1534_v28, 0.0 }
 0x22e   : > { %v757_v27 = vpop.xlane.xlu1 %756  ;;  %789 = vadd.xlane.f32.xlu1 %v788_v26 }
 0x22f   : > { %1541 = vpow2.f32 %v778_v25  ;;  %v765_v29 = vsub.f32 %v732_v38, %v757_v27 }
 0x230   : > { %v1536_v32 = vpop.eup %1535 }
 0x231   : > { %v780_v30 = vmul.f32 1.442695, %v765_v29  ;;  %v791_v35 = vsel %vm733_vm10, %v1536_v32, 0.0 }
 0x232   : > { %783 = vadd.xlane.f32.xlu1 %v782_v31 }
 0x233   : > { %1543 = vpow2.f32 %v780_v30 }
 0x234   : > { %v1538_v33 = vpop.eup %1537 }
 0x235   : > { %v794_v34 = vsel %vm733_vm10, %v1538_v33, 0.0 }
 0x236   : > { %795 = vadd.xlane.f32.xlu0 %v794_v34  ;;  %792 = vadd.xlane.f32.xlu1 %v791_v35 }
 0x238   : > { %v1540_v36 = vpop.eup %1539 }
 0x239   : > { %v797_v37 = vsel %vm733_vm10, %v1540_v36, 0.0 }
 0x23a   : > { %798 = vadd.xlane.f32.xlu1 %v797_v37 }
 0x23c   : > { %v1890_v39 = vpop.eup %1541 }
 0x23d   : > { %v800_v40 = vsel %vm733_vm10, %v1890_v39, 0.0 }
 0x23e   : > { %801 = vadd.xlane.f32.xlu0 %v800_v40 }
 0x240   : > { %v1894_v41 = vpop.eup %1543 }
 0x241   : > { %v803_v42 = vsel %vm733_vm10, %v1894_v41, 0.0  ;;  %vm831_vm10 = vcmask 1041409  }
 0x242   : > { %804 = vadd.xlane.f32.xlu1 %v803_v42 }
 0x253   : > { %1027 = vrot.lane.b32.xlu1 %v1766_v10, %s1629_s15  ;;  %s1389_s15 = sshll.u32 %s266_s28, 3 }
 0x254   : > { %938 = vrot.lane.b32.xlu0 %v1766_v10, %s1630_s29  ;;  %s1401_s29 = sshll.u32 %s1692_s25, 7  ;;  %s1567_s25 = sshll.u32 %s1635_s17, 4  ;;  %s1568_s25 = int_to_ptr.vmem [resolvable:$false] %s1567_s25 }
 0x255   : > { %s1300_s13 = scalar_lea.hbm %s2026_s6, %s1401_s29  ;;  %s1569_s18 = scalar_lea.vmem %s1568_s25, 256 }
 0x257   : > { %1116 = vrot.lane.b32.xlu1 %v1766_v10, %s1631_s9  ;;  %s268_s9 = scalar_lea.vmem [#allocation2], %s1389_s15 }
 0x258   : > { %s1302_s10 = sshll.u32 %s268_s9, 4  ;;  %s1303_s10 = int_to_ptr.vmem [resolvable:$true] %s1302_s10 }
 0x259   : > { %s1563_s16 = scalar_lea.vmem %s1303_s10, 128  ;;  %p1570_p0 = scmp.lt.s32.totalorder %s1303_s10, %s1568_s25 }
 0x25a   : > { %p1564_p11 = scmp.ne.s32.totalorder %s1303_s10, %s1563_s16  ;;  %p1571_p1 = scmp.lt.s32.totalorder %s1569_s18, %s1563_s16 }
 0x25c   : > { %p1565_p12 = pnand %p1564_p11, %p1709_p5  ;;  %p1572_p2 = por %p1571_p1, %p1570_p0 }
 0x25e   : > { %p1566_p13 = pneg %p1565_p12 }
 0x260   : > { %p1573_p3 = pnand %p1572_p2, %p1566_p13 }
 0x2b3   : > { %v787_v43 = vpop.xlane.xlu1 %786 }
 0x2b4   : > { %1545 = vrcp.f32 %v787_v43 }
 0x2b7   : > { %v790_v44 = vpop.xlane.xlu1 %789 }
 0x2bb   : > { %v784_v45 = vpop.xlane.xlu1 %783 }
 0x2bc   : > { %1547 = vrcp.f32 %v784_v45 }
 0x2bd   : > { %1549 = vrcp.f32 %v790_v44 }
 0x2bf   : > { %v796_v46 = vpop.xlane.xlu0 %795  ;;  %v793_v47 = vpop.xlane.xlu1 %792 }
 0x2c0   : > { %1551 = vrcp.f32 %v793_v47 }
 0x2c1   : > { %1553 = vrcp.f32 %v796_v46  ;;  %v1546_v50 = vpop.eup %1545 }
 0x2c2   : > { %v815_v10 = vmul.f32 %v1546_v50, %v1530_v19 }
 0x2c3   : > { %v799_v48 = vpop.xlane.xlu1 %798 }
 0x2c4   : > { %1555 = vrcp.f32 %v799_v48  ;;  %v830_v61 = vrot.slane %v815_v10, 7  ;;  %v1014_v62 = vrot.slane %v815_v10, 1  ;;  %v1103_v9 = vrot.slane %v815_v10, 2 }
 0x2c7   : > { %v802_v49 = vpop.xlane.xlu0 %801 }
 0x2c8   : > { %1557 = vrcp.f32 %v802_v49 }
 0x2c9   : > { %v1548_v51 = vpop.eup %1547 }
 0x2ca   : > { %v1550_v52 = vpop.eup %1549  ;;  %v814_v54 = vmul.f32 %v1548_v51, %v1534_v28 }
 0x2cb   : > { %v805_v53 = vpop.xlane.xlu1 %804  ;;  %v1901_v56 = vmul.f32 %v1550_v52, %v1532_v23  ;;  %v939_v42 = vpop.permute.xlu0 %938 }
 0x2cc   : > { %1559 = vrcp.f32 %v805_v53  ;;  %v1013_v59 = vrot.slane %v814_v54, 2  ;;  %v924_v63 = vrot.slane %v814_v54, 1  ;;  %v832_v2 = vsel %vm831_vm10, %v830_v61, %v814_v54 }
 0x2cd   : > { %v1552_v55 = vpop.eup %1551  ;;  %v833_v14 = vrot.slane %v1901_v56, 6  ;;  %v926_v11 = vrot.slane %v1901_v56, 7  ;;  %v1102_v12 = vrot.slane %v814_v54, 3  ;;  %v1105_v28 = vrot.slane %v1901_v56, 1 }
 0x2ce   : > { %v1554_v58 = vpop.eup %1553  ;;  %v1903_v60 = vmul.f32 %v1552_v55, %v1536_v32  ;;  %v1015_v5 = vsel %vm831_vm10, %v1014_v62, %v1013_v59  ;;  %v925_v16 = vsel %vm831_vm10, %v815_v10, %v924_v63  ;;  %v1211_v62 = vld [vmem:[%s2025_s5 + $0x18] sm:$0xff]  ;;  %v1210_v63 = vld [vmem:[%s2025_s5 + $0x10] sm:$0xff] }
 0x2cf   : > { %v1028_v57 = vpop.permute.xlu1 %1027  ;;  %v1906_v0 = vmul.f32 %v1554_v58, %v1538_v33  ;;  %v835_v15 = vsel %vm834_vm3, %v833_v14, %v832_v2  ;;  %v1016_v18 = vsel %vm834_vm3, %v1901_v56, %v1015_v5  ;;  %v927_v30 = vsel %vm834_vm3, %v926_v11, %v925_v16  ;;  %v1208_v2 = vld [vmem:[%s2025_s5] sm:$0xff] }
 0x2d0   : > { %1460 = vmatpush3.msra.mxu0 %v1028_v57  ;;  %v836_v4 = vrot.slane %v1903_v60, 5  ;;  %v1017_v6 = vrot.slane %v1903_v60, 7  ;;  %v928_v20 = vrot.slane %v1903_v60, 6  ;;  %v1104_v32 = vsel %vm831_vm10, %v1103_v9, %v1102_v12 }
 0x2d1   : > { %1469 = vmatprep.subr.mxu0 %v1625_v1  ;;  %v1556_v38 = vpop.eup %1555  ;;  %v839_v17 = vrot.slane %v1906_v0, 4  ;;  %v1019_v19 = vrot.slane %v1906_v0, 6  ;;  %v930_v31 = vrot.slane %v1906_v0, 5  ;;  %v1106_v46 = vsel %vm834_vm3, %v1105_v28, %v1104_v32 }
 0x2d2   : > { %v1910_v3 = vmul.f32 %v1556_v38, %v1540_v36  ;;  %v838_v21 = vsel %vm837_vm4, %v836_v4, %v835_v15  ;;  %v1018_v23 = vsel %vm837_vm4, %v1017_v6, %v1016_v18  ;;  %v929_v35 = vsel %vm837_vm4, %v928_v20, %v927_v30 }
 0x2d3   : > { %v841_v33 = vsel %vm840_vm5, %v839_v17, %v838_v21  ;;  %v1020_v34 = vsel %vm840_vm5, %v1019_v19, %v1018_v23  ;;  %v931_v50 = vsel %vm840_vm5, %v930_v31, %v929_v35  ;;  %v1108_v51 = vrot.slane %v1906_v0, 7  ;;  %v1117_v10 = vpop.permute.xlu1 %1116  ;;  %v1209_v0 = vld [vmem:[%s2025_s5 + $0x8] sm:$0xff] }
 0x2d4   : > { %v842_v22 = vrot.slane %v1910_v3, 3  ;;  %v1021_v24 = vrot.slane %v1910_v3, 5  ;;  %v932_v36 = vrot.slane %v1910_v3, 4  ;;  %v1107_v52 = vsel %vm837_vm4, %v1903_v60, %v1106_v46 }
 0x2d5   : > { %v1558_v7 = vpop.eup %1557  ;;  %v1110_v54 = vrot.slane %v1910_v3, 6  ;;  %v1109_v59 = vsel %vm840_vm5, %v1108_v51, %v1107_v52 }
 0x2d6   : > { %v820_v13 = vmul.f32 %v1558_v7, %v1890_v39  ;;  %v844_v37 = vsel %vm843_vm6, %v842_v22, %v841_v33  ;;  %v1022_v40 = vsel %vm843_vm6, %v1021_v24, %v1020_v34  ;;  %v933_v53 = vsel %vm843_vm6, %v932_v36, %v931_v50 }
 0x2d7   : > { %v1111_v60 = vsel %vm843_vm6, %v1110_v54, %v1109_v59 }
 0x2d8   : > { %v845_v26 = vrot.slane %v820_v13, 2  ;;  %v1023_v27 = vrot.slane %v820_v13, 4  ;;  %v934_v45 = vrot.slane %v820_v13, 3  ;;  %v1112_v56 = vrot.slane %v820_v13, 5 }
 0x2d9   : > { %v1560_v25 = vpop.eup %1559 }
 0x2da   : > { %v821_v29 = vmul.f32 %v1560_v25, %v1894_v41  ;;  %v847_v43 = vsel %vm846_vm7, %v845_v26, %v844_v37  ;;  %v1024_v44 = vsel %vm846_vm7, %v1023_v27, %v1022_v40  ;;  %v935_v55 = vsel %vm846_vm7, %v934_v45, %v933_v53 }
 0x2db   : > { %v1113_v61 = vsel %vm846_vm7, %v1112_v56, %v1111_v60 }
 0x2dc   : > { %v848_v39 = vrot.slane %v821_v29, 1  ;;  %v1025_v41 = vrot.slane %v821_v29, 3  ;;  %v936_v49 = vrot.slane %v821_v29, 2  ;;  %v1114_v58 = vrot.slane %v821_v29, 4 }
 0x2de   : > { %v850_v47 = vsel %vm849_vm8, %v848_v39, %v847_v43  ;;  %v1026_v48 = vsel %vm849_vm8, %v1025_v41, %v1024_v44  ;;  %v937_v57 = vsel %vm849_vm8, %v936_v49, %v935_v55  ;;  %v1115_v38 = vsel %vm849_vm8, %v1114_v58, %v1113_v61 }
 0x2df   : > { %1452 = vmatmul.mubr.msk.f32.vlgmr.msra.gmra.mxu1 %vm851_vm9, %v850_v47  ;;  %1462 = vmatmul.mubr.msk.f32.vlgmr.msra.gmra.mxu0 %vm851_vm9, %v1026_v48 }
 0x2e0   : > { %1455 = vmatpush3.msra.mxu1 %v939_v42  ;;  %1456 = vmatprep.mubr.msk.f32.mxu1 %vm1626_vm0, %v1625_v1 }
 0x2e1   : > { %1464 = vmatprep.subr.mxu1 %v1625_v1  ;;  %1477 = vmatprep.mubr.msk.f32.mxu0 %vm1626_vm0, %v1625_v1 }
 0x2e2   : > { %1470 = vmatpush3.msra.mxu0 %v1211_v62 }
 0x2e3   : > { %1457 = vmatmul.mubr.msk.f32.vlgmr.msra.gmra.mxu1 %vm851_vm9, %v937_v57  ;;  %1471 = vmatprep.subr.mxu0 %v1625_v1 }
 0x2e4   : > { %1465 = vmatpush3.msra.mxu1 %v1117_v10  ;;  %1466 = vmatprep.mubr.msk.f32.mxu1 %vm1626_vm0, %v1625_v1  ;;  %vm1204_vm0 = vcmask 130048  }
 0x2e5   : > { %1472 = vmatpush3.msra.mxu0 %v1210_v63 }
 0x2e6   : > { %1473 = vmatprep.subr.mxu0 %v1625_v1 }
 0x2e7   : > { %1467 = vmatmul.mubr.msk.f32.vlgmr.msra.gmra.mxu1 %vm851_vm9, %v1115_v38  ;;  %1474 = vmatpush3.msra.mxu0 %v1209_v0 }
 0x2e8   : > { %1475 = vmatprep.subr.mxu0 %v1625_v1 }
 0x2e9   : > { %1476 = vmatpush3.msra.mxu0 %v1208_v2 }
 0x39f   : > { %v920_v14 = vpop.f32.mrf.mxu1  ;;  %v1098_v3 = vpop.f32.mrf.mxu0 }
 0x3a0   : > { %1196 = vrot.lane.b32.xlu1 %v1098_v3, %s1632_s19 }
 0x3a1   : > { %v1453_v4 = vpop.f32.mrf.mxu1  ;;  %v1463_v5 = vpop.f32.mrf.mxu0 }
 0x3a3   : > { %v1009_v6 = vpop.f32.mrf.mxu1 }
 0x3a4   : > { %1192 = vrot.lane.b32.xlu0 %v1009_v6, %s1633_s20 }
 0x3a5   : > { %v1458_v7 = vpop.f32.mrf.mxu1 }
 0x3a7   : > { %v1187_v9 = vpop.f32.mrf.mxu1 }
 0x3a8   : > { %1200 = vrot.lane.b32.xlu0 %v1187_v9, %s1634_s26 }
 0x3a9   : > { %v1468_v1 = vpop.f32.mrf.mxu1 }
 0x412   : > { %v1197_v13 = vpop.permute.xlu1 %1196 }
 0x416   : > { %v1193_v11 = vpop.permute.xlu0 %1192 }
 0x417   : > { %v1203_v12 = vsel %vm851_vm9, %v920_v14, %v1193_v11 }
 0x418   : > { %v1205_v16 = vsel %vm1204_vm0, %v1203_v12, %v1197_v13 }
 0x41a   : > { %v1201_v15 = vpop.permute.xlu0 %1200 }
 0x41b   : > { %v1207_v17 = vsel %vm1206_vm11, %v1205_v16, %v1201_v15 }
 0x41c   : > { %1478 = vmatmul.mubr.msk.f32.vlgmr.msra.gmra.mxu0 %vm289_vm1, %v1207_v17 }
 0x4dc   : > { %v1281_v18 = vpop.f32.mrf.mxu0 }
 0x4dd   : > { %1561 = vtanh.f32 %v1281_v18 }
 0x4de   : > { %v1479_v19 = vpop.f32.mrf.mxu0 }
 0x4ea   : > { %v1562_v20 = vpop.eup %1561 }
 0x4eb   : > { %v1286_v21 = vadd.f32 %v1562_v20, %v1758_v8 }
 0x4ed   : > { %1287 = vst.msk [vmem:[%s268_s9] sm:$0xff] %vm289_vm1, %v1286_v21 }
 0x4ee   : > { %1576 = shalt.err (!%p1573_p3)
}
 0x4ef   : > { %s1577_s19 = scalar_lea.hbm %s1300_s13, 128  ;;  %s1581_s28 = scalar_lea.hbm %s2026_s6, 256 }
 0x4f0   : > { %p1578_p4 = scmp.ne.s32.totalorder %s1300_s13, %s1577_s19  ;;  %p1582_p9 = scmp.lt.s32.totalorder %s1300_s13, %s2026_s6 }
 0x4f1   : > { %p1583_p10 = scmp.lt.s32.totalorder %s1581_s28, %s1577_s19 }
 0x4f2   : > { %p1579_p7 = pnand %p1578_p4, %p1709_p5 }
 0x4f3   : > { %p1584_p11 = por %p1583_p10, %p1582_p9 }
 0x4f4   : > { %p1580_p8 = pneg %p1579_p7 }
 0x4f6   : > { %p1585_p12 = pnand %p1584_p11, %p1580_p8 }
 0x4f8   : > { %1588 = shalt.err (!%p1585_p12)
}
 0x4f9   : > { %1480 = dma.vmem_to_hbm [thread:$0]  (%p1709_p5), %s1303_s10, 128, %s1300_s13, %s1289_s14  }
 0x4fa PF: > { %p1486_p13 = scmp.ge.s32.totalorder %s1623_s24, 2  ;;  %s1314_s9 = sand.u32 1, %s1611_s21  }
 0x4fb   : > { %s1315_s11 = scalar_lea.sflag [#allocation3], %s1314_s9 }
 0x4fc   : > { %p1483_p0 = pnand %p1486_p13, %p1713_p6 }
 0x4fe   : > { %p1484_p1 = pneg %p1483_p0 }
 0x500   : > { %1606 = dma.done.wait (%p1484_p1), %s1315_s11, 128  }
 0x501   : > { %1608 = vsyncadd (%p1484_p1), %s1315_s11, 4294967168  ;;  %p16_p2 = scmp.ge.s32.totalorder %s1696_s27, 4   ;;  %s2039_s21 = smov %s1615_s22 }
 0x502   : > { %s2040_s22 = smov %s1619_s23  ;;  %s2041_s23 = smov %s1707_s30 }
 0x503   : > { %s2042_s24 = smov %s1696_s27  ;;  %18 = sbr.rel (!%p16_p2) target bundleno = 3 (0x3), region = 85 }
 0x508   :  { %1320 = vsyncpa [#allocation3], 1 }
 0x509   :  { %1322 = vsyncpa [#allocation3 + $0x1], 1 }

</bundles_post_ra>
